<compile_context>
chip_gen: v5e
topology: v5e:2x2
jax: 0.10.0
libtpu: 0.0.40
codegen_flags: <defaults>
</compile_context>

<pallas_src>
import jax
import jax.numpy as jnp
from jax.experimental import pallas as pl
from jax.experimental.pallas import tpu as pltpu

_LANE = 128
_SUBLANE = 8


def _cdiv(a, b):
    return (a + b - 1) // b


def _round_up(x, m):
    return ((x + m - 1) // m) * m


def _num_tensorcores_per_chip():
    """2 for chips whose TensorCores share one Pallas grid (v4/v5p megacore,
    v7x dual-TC); 1 for v5e/v6e.  Falls back to 1 if the query fails."""
    try:
        kind = jax.devices()[0].device_kind.lower()
    except Exception:
        return 1
    return 2 if any(tag in kind for tag in ("v4", "v5p", "v7")) else 1


def _choose_tiles(B, H, w_itemsize, x_itemsize, o_itemsize,
                  block_m=None, block_n=None):
    """Byte-budgeted (TM, TN) selection.  Budget is conservative for the
    smallest per-TensorCore VMEM (64 MiB on v7x)."""
    BUDGET = 28 << 20          # all double-buffered blocks must fit here
    TM_CAP = 1024              # batch rows per tile for huge (training) batches
    bias_bytes = 2 * H * 4     # resident-ish bias, generous

    # ---- M (batch) tile ------------------------------------------------------
    if block_m is not None:
        tm = min(block_m, B)
    else:
        tm = B if B <= TM_CAP else TM_CAP
        # Shrink further if the resident x block alone would eat the budget.
        if 2 * tm * H * x_itemsize > BUDGET // 2:
            tm = min(B, max(_SUBLANE,
                            ((BUDGET // 2) // (2 * H * x_itemsize))
                            // _SUBLANE * _SUBLANE))
    if tm < B:
        tm = max(_SUBLANE, (tm // _SUBLANE) * _SUBLANE)  # aligned unless full-B
    m_tiles = _cdiv(B, tm)

    x_bytes = 2 * tm * H * x_itemsize

    def usage(tn):
        return (2 * tn * H * w_itemsize      # double-buffered weight tile
                + x_bytes                    # resident x block (2 buffers)
                + 2 * tm * tn * o_itemsize   # double-buffered output tile
                + bias_bytes)

    # ---- N (output-feature) tile --------------------------------------------
    if block_n is not None:
        tn = min(block_n, H)
    elif usage(H) <= BUDGET:
        tn = H                               # single full-width weight block
    else:
        per_col = 2 * H * w_itemsize + 2 * tm * o_itemsize
        leftover = max(per_col, BUDGET - x_bytes - bias_bytes)
        tn = max(_LANE, (leftover // per_col) // _LANE * _LANE)
        tn = min(tn, H)
        # Re-balance: same tile count, equal-sized lane-aligned tiles.
        n = _cdiv(H, tn)
        tn = min(H, _round_up(_cdiv(H, n), _LANE))
    n_tiles = _cdiv(H, tn)

    # ---- dual-TensorCore chips: even number (>=2) of parallel N tiles --------
    if block_n is None and _num_tensorcores_per_chip() >= 2 and H >= 2 * _LANE:
        if n_tiles % 2 == 1:
            target = n_tiles + 1
            tn = min(H, _round_up(_cdiv(H, target), _LANE))
            n_tiles = _cdiv(H, tn)

    return tm, tn, m_tiles, n_tiles, usage(tn)


def _pooler_kernel(x_ref, w_ref, b_ref, o_ref):
    # x_ref: [TM, H]   first-token activations (resident across the N axis)
    # w_ref: [TN, H]   weight tile in PyTorch [out, in] layout
    # b_ref: [1, TN]   bias tile (a single resident block when n_tiles == 1)
    # o_ref: [TM, TN]  output tile
    x = x_ref[...]
    w = w_ref[...]
    if x.dtype != w.dtype:        # static: only when the weight is streamed narrow
        x = x.astype(w.dtype)
    # Contract x's last dim against w's last dim (trans-B matmul, handled
    # natively by the MXU -> no XLU transpose of the weight tile); f32 acc.
    acc = jax.lax.dot_general(
        x, w,
        dimension_numbers=(((1,), (1,)), ((), ())),
        preferred_element_type=jnp.float32,
    )
    acc = acc + b_ref[...].astype(jnp.float32)
    o_ref[...] = jnp.tanh(acc).astype(o_ref.dtype)


def bert_pooler(hidden_states, weight, bias, *,
                weight_stream_dtype=None, block_m=None, block_n=None):
    """Pallas-TPU BertPooler forward.

    hidden_states: [B, S, H]; weight: [H, H] in PyTorch [out, in] layout;
    bias: [H].  Returns [B, H] = tanh(hidden_states[:, 0] @ weight.T + bias).

    weight_stream_dtype: optionally stream the weight in a narrower dtype
    (e.g. jnp.bfloat16) to roughly halve the dominant HBM traffic; None keeps
    the exact dtype/semantics of the reference module.
    """
    B, S, H = hidden_states.shape
    H_out, H_in = weight.shape
    assert H_in == H and H_out == H and bias.shape == (H,)

    # First-token gather stays one tiny XLA slice ([B,S,H] -> [B,H]); streaming
    # all of [B,S,H] through the kernel would cost S x more HBM traffic.
    x = hidden_states[:, 0, :]
    if weight_stream_dtype is not None and weight.dtype != weight_stream_dtype:
        weight = weight.astype(weight_stream_dtype)
    b2 = bias.reshape(1, H)

    out_dtype = hidden_states.dtype
    tm, tn, m_tiles, n_tiles, vmem_need = _choose_tiles(
        B, H,
        w_itemsize=weight.dtype.itemsize,
        x_itemsize=x.dtype.itemsize,
        o_itemsize=jnp.dtype(out_dtype).itemsize,
        block_m=block_m, block_n=block_n)

    cost = pl.CostEstimate(
        flops=2 * B * H * H,
        transcendentals=B * H,
        bytes_accessed=int(weight.size * weight.dtype.itemsize   # weight stream
                           + x.size * x.dtype.itemsize           # x in
                           + bias.size * bias.dtype.itemsize     # bias in
                           + B * H * jnp.dtype(out_dtype).itemsize),  # out
    )
    vmem_limit = int(min(max(vmem_need + (8 << 20), 32 << 20), 56 << 20))

    # N leads the grid so dual-TC chips shard the weight stream across both
    # cores; there is no reduction grid axis (K stays whole inside each tile).
    out = pl.pallas_call(
        _pooler_kernel,
        out_shape=jax.ShapeDtypeStruct((B, H), out_dtype),
        grid_spec=pltpu.PrefetchScalarGridSpec(
            num_scalar_prefetch=0,
            grid=(n_tiles, m_tiles),
            in_specs=[
                # x: resident across the N axis, tiled over M (full B usually).
                pl.BlockSpec((tm, H), lambda j, i: (i, 0)),
                # weight: streamed over the output-feature axis.
                pl.BlockSpec((tn, H), lambda j, i: (j, 0)),
                # bias tile (degenerates to one resident block when n_tiles==1).
                pl.BlockSpec((1, tn), lambda j, i: (0, j)),
            ],
            out_specs=pl.BlockSpec((tm, tn), lambda j, i: (i, j)),
        ),
        compiler_params=pltpu.CompilerParams(
            dimension_semantics=("parallel", "parallel"),
            vmem_limit_bytes=vmem_limit,
        ),
        cost_estimate=cost,
    )(x, weight, b2)

    return out


if __name__ == "__main__":
    # --- primary check: module-sized small shapes (B=2, S=8, H=32), exact f32.
    key = jax.random.PRNGKey(0)
    B, S, H = 2, 8, 32
    k1, k2, k3 = jax.random.split(key, 3)
    hidden_states = jax.random.normal(k1, (B, S, H), dtype=jnp.float32)
    bound = 1.0 / (H ** 0.5)  # mimic nn.Linear uniform init, PyTorch [out,in]
    weight = jax.random.uniform(k2, (H, H), minval=-bound, maxval=bound,
                                dtype=jnp.float32)
    bias = jax.random.uniform(k3, (H,), minval=-bound, maxval=bound,
                              dtype=jnp.float32)

    out = jax.block_until_ready(bert_pooler(hidden_states, weight, bias))
    ref = jnp.tanh(hidden_states[:, 0, :] @ weight.T + bias)
    assert out.shape == (B, H)
    assert jnp.allclose(out, ref, atol=1e-5, rtol=1e-5)

    # --- multi-tile N path (forced TN=128) + batch not a multiple of 8.
    B2, S2, H2 = 5, 6, 256
    k4, k5, k6 = jax.random.split(jax.random.PRNGKey(1), 3)
    hs2 = jax.random.normal(k4, (B2, S2, H2), dtype=jnp.float32)
    bound2 = 1.0 / (H2 ** 0.5)
    w2 = jax.random.uniform(k5, (H2, H2), minval=-bound2, maxval=bound2,
                            dtype=jnp.float32)
    bi2 = jax.random.uniform(k6, (H2,), minval=-bound2, maxval=bound2,
                             dtype=jnp.float32)
    out2 = jax.block_until_ready(bert_pooler(hs2, w2, bi2, block_n=128))
    ref2 = jnp.tanh(hs2[:, 0, :] @ w2.T + bi2)
    assert jnp.allclose(out2, ref2, atol=1e-5, rtol=1e-5)

    # --- bf16 weight streaming (halved weight HBM bytes, f32 accumulate).
    out3 = jax.block_until_ready(
        bert_pooler(hs2, w2, bi2, weight_stream_dtype=jnp.bfloat16))
    assert jnp.allclose(out3, ref2, atol=2e-2, rtol=2e-2)

    print("KERNEL_OK")
</pallas_src>

<mosaic_0001>
module attributes {stable_mosaic.version = 11 : i64} {
  func.func @_pooler_kernel(%arg0: i32, %arg1: i32, %arg2: memref<2x32xf32, #tpu.memory_space<vmem>>, %arg3: memref<32x32xf32, #tpu.memory_space<vmem>>, %arg4: memref<1x32xf32, #tpu.memory_space<vmem>>, %arg5: memref<2x32xf32, #tpu.memory_space<vmem>>) attributes {dimension_semantics = [#tpu.dimension_semantics<parallel>, #tpu.dimension_semantics<parallel>], iteration_bounds = array<i64: 1, 1>, scalar_prefetch = 0 : i64, scratch_operands = 0 : i64, tpu.core_type = #tpu.core_type<tc>, window_params = [{transform_indices = @transform_0, window_bounds = array<i64: 2, 32>}, {transform_indices = @transform_1, window_bounds = array<i64: 32, 32>}, {transform_indices = @transform_2, window_bounds = array<i64: 1, 32>}, {transform_indices = @transform_3, window_bounds = array<i64: 2, 32>}]} {
    %c0 = arith.constant 0 : index
    %c0_0 = arith.constant 0 : index
    %0 = vector.load %arg2[%c0, %c0_0] : memref<2x32xf32, #tpu.memory_space<vmem>>, vector<2x32xf32>
    %c0_1 = arith.constant 0 : index
    %c0_2 = arith.constant 0 : index
    %1 = vector.load %arg3[%c0_1, %c0_2] : memref<32x32xf32, #tpu.memory_space<vmem>>, vector<32x32xf32>
    %cst = arith.constant dense<0.000000e+00> : vector<2x32xf32>
    %2 = tpu.matmul %0, %1, %cst {dimension_numbers = #tpu.dot_dimension_numbers<[1], [1], [0], [0], [0, 0, 1, 0], [], []>} : vector<2x32xf32>, vector<32x32xf32>, vector<2x32xf32> -> vector<2x32xf32>
    %c0_3 = arith.constant 0 : index
    %c0_4 = arith.constant 0 : index
    %3 = vector.load %arg4[%c0_3, %c0_4] : memref<1x32xf32, #tpu.memory_space<vmem>>, vector<1x32xf32>
    %4 = vector.broadcast %3 : vector<1x32xf32> to vector<2x32xf32>
    %5 = arith.addf %2, %4 : vector<2x32xf32>
    %6 = math.tanh %5 : vector<2x32xf32>
    %c0_5 = arith.constant 0 : index
    %c0_6 = arith.constant 0 : index
    %7 = vector.load %arg5[%c0_5, %c0_6] : memref<2x32xf32, #tpu.memory_space<vmem>>, vector<2x32xf32>
    tpu.vector_store %arg5[%c0_5, %c0_6], %6 {strides = array<i32>} : memref<2x32xf32, #tpu.memory_space<vmem>>, vector<2x32xf32>,
    return
  }
  func.func @transform_0(%arg0: i32, %arg1: i32) -> (i32, i32) {
    %c0_i32 = arith.constant 0 : i32
    %c0_i32_0 = arith.constant 0 : i32
    return %arg1, %c0_i32 : i32, i32
  }
  func.func @transform_1(%arg0: i32, %arg1: i32) -> (i32, i32) {
    %c0_i32 = arith.constant 0 : i32
    %c0_i32_0 = arith.constant 0 : i32
    return %arg0, %c0_i32 : i32, i32
  }
  func.func @transform_2(%arg0: i32, %arg1: i32) -> (i32, i32) {
    %c0_i32 = arith.constant 0 : i32
    %c0_i32_0 = arith.constant 0 : i32
    return %c0_i32, %arg0 : i32, i32
  }
  func.func @transform_3(%arg0: i32, %arg1: i32) -> (i32, i32) {
    %c0_i32 = arith.constant 0 : i32
    return %arg1, %arg0 : i32, i32
  }
}

</mosaic_0001>

<bundles_post_ra>
// kernel: tpu_custom_call.1
= control target key start
LH: loop header
LB: loop body
LE: loop exit
PB: predicated region body
PF: predicated region fallthrough
CT: control target
= control target key end

     0   :  { %8 = vsyncpa [#allocation3], 0  ;;  %s239_s0 = inlined_call_operand.hbm [shape: f32[2,32], index: 0, kind: input, shape index: {}]   ;;  %s240_s1 = inlined_call_operand.hbm [shape: f32[32,32], index: 1, kind: input, shape index: {}]   ;;  %s241_s2 = inlined_call_operand.vmem [shape: f32[1,32], index: 2, kind: input, shape index: {}]   ;;  %s242_s3 = inlined_call_operand.hbm [shape: f32[2,32], index: 3, kind: output, shape index: {}]  }
   0x1   :  { %9 = vsyncpa [#allocation6], 0 }
   0x2   :  { %10 = vsyncpa [#allocation4], 0  ;;  %s16_s14 = sshll.u32 %s239_s0, 4  ;;  %s202_s15 = smov [#allocation2]   ;;  %s17_s14 = int_to_ptr.hbm [resolvable:$true] %s16_s14 }
   0x3   :  { %s18_s16 = sshll.u32 %s202_s15, 4  ;;  %s26_s19 = sshll.u32 %s240_s1, 4  ;;  %s19_s16 = int_to_ptr.vmem [resolvable:$true] %s18_s16  ;;  %s27_s19 = int_to_ptr.hbm [resolvable:$true] %s26_s19 }
   0x4   :  { %21 = dma.hbm_to_vmem [thread:$0]  %s17_s14, 32, %s19_s16, [#allocation3]  }
   0x5   :  { %s203_s20 = smov [#allocation5]   ;;  %s204_s22 = smov 128  }
   0x6   :  { %s28_s21 = sshll.u32 %s203_s20, 4  ;;  %s205_s23 = smov 8   ;;  %s29_s21 = int_to_ptr.vmem [resolvable:$true] %s28_s21 }
   0x7   :  { %34 = dma.hbm_to_vmem [thread:$0]  %s27_s19, 512, %s29_s21, [#allocation6], %s204_s22, %s204_s22, %s205_s23  }
   0x8   :  { %196 = dma.done.wait [#allocation3], 32  }
   0x9   :  { %197 = vsyncadd [#allocation3], 4294967264 }
   0xa   :  { %198 = dma.done.wait [#allocation6], 512  }
   0xb   :  { %199 = vsyncadd [#allocation6], 4294966784  ;;  %vm54_vm0 = vcmask 261120   ;;  %v49_v0 = vld [vmem:[#allocation5 + $0x18] sm:$0xff]  ;;  %v48_v1 = vld [vmem:[#allocation5 + $0x10] sm:$0xff]  ;;  %s206_s24 = smov [#allocation7]  }
   0xc   :  { %111 = vmatpush.xpose.msk.msra.mxu0 %vm54_vm0, %v49_v0  ;;  %v47_v2 = vld [vmem:[#allocation5 + $0x8] sm:$0xff]  ;;  %v46_v3 = vld [vmem:[#allocation5] sm:$0xff]  ;;  %v45_v4 = vld [vmem:[#allocation2] sm:$0x3]  ;;  %s98_s25 = sshll.u32 %s206_s24, 4  ;;  %s100_s28 = sshll.u32 %s242_s3, 4  ;;  %s99_s25 = int_to_ptr.vmem [resolvable:$true] %s98_s25  ;;  %s101_s28 = int_to_ptr.hbm [resolvable:$true] %s100_s28 }
   0xd   :  { %v121_v5 = vld [vmem:[%s241_s2] ss:$0 sm:$0xff]  ;;  %vm91_vm1 = vcmask 254976  }
  0x10   :  { %112 = vmatpush.xpose.msk.msra.mxu0 %vm54_vm0, %v48_v1 }
  0x14   :  { %113 = vmatpush.xpose.msk.msra.mxu0 %vm54_vm0, %v47_v2 }
  0x18   :  { %114 = vmatpush.xpose.msk.msra.mxu0 %vm54_vm0, %v46_v3 }
  0x1b   :  { %115 = vmatmul.msk.f32.vlgmr.msra.gmra.mxu0 %vm54_vm0, %v45_v4 }
  0x98   :  { %v87_v6 = vpop.f32.mrf.mxu0 }
  0x99   :  { %v88_v7 = vadd.f32 %v121_v5, %v87_v6 }
  0x9b   :  { %122 = vtanh.f32 %v88_v7 }
  0xa1   :  { %v123_v8 = vpop.eup %122 }
  0xa2   :  { %92 = vst.msk [vmem:[#allocation7] sm:$0x3] %vm91_vm1, %v123_v8 }
  0xa3   :  { %103 = dma.vmem_to_hbm [thread:$0]  %s99_s25, 32, %s101_s28, [#allocation4]  }
  0xa4   :  { %200 = dma.done.wait [#allocation4], 32  }
  0xa5   :  { %201 = vsyncadd [#allocation4], 4294967264 }
  0xa6   :  { %108 = vsyncpa [#allocation3], 1 }
  0xa7   :  { %109 = vsyncpa [#allocation6], 1 }
  0xa8   :  { %110 = vsyncpa [#allocation4], 1 }

</bundles_post_ra>
